<compile_context>
chip_gen: v6e
topology: v6e:2x2x1
jax: 0.10.0
libtpu: 0.0.40
codegen_flags: <defaults>
</compile_context>

<pallas_src>
import jax
import jax.numpy as jnp
from jax.experimental import pallas as pl
from jax.experimental.pallas import tpu as pltpu


# ----------------------------------------------------------------------------
# Kernels
# ----------------------------------------------------------------------------
def net_sigmoid_kernel(x_ref, w1_ref, b1_ref, w2_ref, b2_ref, o_ref):
    # feature-last: x (TB, n_in), W (in, out), b (1, out)
    h = jnp.dot(x_ref[...], w1_ref[...], preferred_element_type=jnp.float32)
    h = jax.nn.sigmoid(h + b1_ref[...])              # (TB, H) + (1, H)
    y = jnp.dot(h, w2_ref[...], preferred_element_type=jnp.float32)
    o_ref[...] = (y + b2_ref[...]).astype(o_ref.dtype)


def net_sigmoid_t_kernel(xt_ref, w1t_ref, b1t_ref, w2t_ref, b2t_ref, ot_ref):
    # feature-major: x^T (n_in, TB), W^T (out, in), b^T (out, 1)
    h = jnp.dot(w1t_ref[...], xt_ref[...], preferred_element_type=jnp.float32)
    h = jax.nn.sigmoid(h + b1t_ref[...])             # (H, TB) + (H, 1)
    y = jnp.dot(w2t_ref[...], h, preferred_element_type=jnp.float32)
    ot_ref[...] = (y + b2t_ref[...]).astype(ot_ref.dtype)


# ----------------------------------------------------------------------------
# Tile sizing (lane-padding-aware VMEM accounting)
# ----------------------------------------------------------------------------
def _round_up(v, m):
    return ((v + m - 1) // m) * m


# Conservative budget for the streamed / per-tile VMEM (double-buffered x and
# out tiles plus ~2 copies of the hidden activation), measured against
# lane-padded (minor dim rounded to 128) widths.  Leaves headroom for compiler
# temporaries and stays well under v5e's 16 MiB default scoped VMEM.
_VMEM_STREAM_BUDGET_BYTES = 8 * 1024 * 1024

# Un-gridded single-block path is used up to this many batch rows/cols (the
# whole padded problem is only a few MiB of VMEM there).
_SINGLE_BLOCK_MAX = 2048


def _pick_block_b_feature_last(n_in, n_hidden, n_out, batch):
    # Per-row VMEM bytes, f32, with minor dims lane-rounded to 128:
    #   2x double-buffered x tile + 2x double-buffered out tile
    #   + ~2x the hidden activation (h and sigmoid(h)).
    per_row = 4 * 2 * (_round_up(n_in, 128)
                       + _round_up(n_out, 128)
                       + _round_up(n_hidden, 128))
    tb = _VMEM_STREAM_BUDGET_BYTES // per_row
    # Ensure the grid has ~8 tiles so v7x's two TensorCores both get work and
    # each core's HBM->VMEM pipeline has something to overlap with.
    tb = min(tb, _round_up(pl.cdiv(batch, 8), 8))
    tb = max(8, (int(tb) // 8) * 8)
    return int(tb)


def _pick_block_b_feature_major(n_in, n_hidden, n_out, batch):
    # Batch is on the lane axis -> per-column bytes use sublane (8) rounding.
    per_col = 4 * 2 * (_round_up(n_in, 8)
                       + _round_up(n_out, 8)
                       + _round_up(n_hidden, 8))
    tb = _VMEM_STREAM_BUDGET_BYTES // per_col
    tb = min(tb, _round_up(pl.cdiv(batch, 8), 128))
    tb = max(128, (int(tb) // 128) * 128)
    return int(tb)


# ----------------------------------------------------------------------------
# Feature-last (torch-layout) paths
# ----------------------------------------------------------------------------
def _net_sigmoid_single_block(x, w1, b1, w2, b2):
    B = x.shape[0]
    n_out = w2.shape[1]
    vmem = lambda: pl.BlockSpec(memory_space=pltpu.MemorySpace.VMEM)
    return pl.pallas_call(
        net_sigmoid_kernel,
        out_shape=jax.ShapeDtypeStruct((B, n_out), x.dtype),
        in_specs=[vmem() for _ in range(5)],
        out_specs=vmem(),
    )(x, w1, b1, w2, b2)


def _net_sigmoid_tiled(x, w1, b1, w2, b2, tb):
    B, n_in = x.shape
    n_hidden = w1.shape[1]
    n_out = w2.shape[1]

    n_tiles = pl.cdiv(B, tb)
    b_pad = n_tiles * tb
    if b_pad != B:
        x = jnp.pad(x, ((0, b_pad - B), (0, 0)))

    out = pl.pallas_call(
        net_sigmoid_kernel,
        out_shape=jax.ShapeDtypeStruct((b_pad, n_out), x.dtype),
        grid=(n_tiles,),
        in_specs=[
            # Streamed x tiles; default double buffering hides the DMA.
            pl.BlockSpec((tb, n_in), lambda i: (i, 0)),
            # Weights / biases: constant index_map -> VMEM-resident, DMA'd once.
            pl.BlockSpec((n_in, n_hidden), lambda i: (0, 0)),
            pl.BlockSpec((1, n_hidden), lambda i: (0, 0)),
            pl.BlockSpec((n_hidden, n_out), lambda i: (0, 0)),
            pl.BlockSpec((1, n_out), lambda i: (0, 0)),
        ],
        out_specs=pl.BlockSpec((tb, n_out), lambda i: (i, 0)),
        compiler_params=pltpu.CompilerParams(
            # Independent batch tiles: v7x's two TensorCores split the grid;
            # harmless on single-TC v5e/v6e.
            dimension_semantics=("parallel",)),
    )(x, w1, b1, w2, b2)

    return out[:B] if b_pad != B else out


def net_sigmoid(x, w1, b1, w2, b2, *, block_b=None):
    """x: (B, n_input); w1: (n_input, n_hidden); b1: (n_hidden,) or (1, n_hidden);
       w2: (n_hidden, n_output); b2: (n_output,) or (1, n_output) -> (B, n_output)."""
    b1 = jnp.reshape(b1, (1, -1))
    b2 = jnp.reshape(b2, (1, -1))
    B = x.shape[0]

    if block_b is not None:
        tb = max(8, (int(block_b) // 8) * 8)
        return _net_sigmoid_tiled(x, w1, b1, w2, b2, tb)

    if B <= _SINGLE_BLOCK_MAX:
        return _net_sigmoid_single_block(x, w1, b1, w2, b2)

    tb = _pick_block_b_feature_last(x.shape[1], w1.shape[1], w2.shape[1], B)
    if pl.cdiv(B, tb) < 4:
        # Not enough tiles to be worth the tiled-path bookkeeping.
        return _net_sigmoid_single_block(x, w1, b1, w2, b2)
    return _net_sigmoid_tiled(x, w1, b1, w2, b2, tb)


# ----------------------------------------------------------------------------
# Lane-dense feature-major path (x supplied transposed, batch on lanes)
# ----------------------------------------------------------------------------
def net_sigmoid_feature_major(x_t, w1, b1, w2, b2, *, block_b=None):
    """x_t: (n_input, B) with batch on the lane axis; returns y^T (n_output, B).
    Same math as net_sigmoid, but the dominant x / y HBM streams are
    lane-dense (no 7/8 lane-padding waste).  Use when the producer/consumer
    can supply/consume the transposed layout."""
    n_in, B = x_t.shape
    n_hidden = w1.shape[1]
    n_out = w2.shape[1]

    # Tiny weight/bias transposes (a few KiB) stay outside the kernel.
    w1t = jnp.transpose(w1)            # (n_hidden, n_in)
    b1t = jnp.reshape(b1, (-1, 1))     # (n_hidden, 1)
    w2t = jnp.transpose(w2)            # (n_out, n_hidden)
    b2t = jnp.reshape(b2, (-1, 1))     # (n_out, 1)

    if block_b is None:
        if B <= _SINGLE_BLOCK_MAX:
            vmem = lambda: pl.BlockSpec(memory_space=pltpu.MemorySpace.VMEM)
            return pl.pallas_call(
                net_sigmoid_t_kernel,
                out_shape=jax.ShapeDtypeStruct((n_out, B), x_t.dtype),
                in_specs=[vmem() for _ in range(5)],
                out_specs=vmem(),
            )(x_t, w1t, b1t, w2t, b2t)
        block_b = _pick_block_b_feature_major(n_in, n_hidden, n_out, B)

    tb = max(128, (int(block_b) // 128) * 128)   # lane multiple
    n_tiles = pl.cdiv(B, tb)
    b_pad = n_tiles * tb
    if b_pad != B:
        x_t = jnp.pad(x_t, ((0, 0), (0, b_pad - B)))

    out = pl.pallas_call(
        net_sigmoid_t_kernel,
        out_shape=jax.ShapeDtypeStruct((n_out, b_pad), x_t.dtype),
        grid=(n_tiles,),
        in_specs=[
            pl.BlockSpec((n_in, tb), lambda i: (0, i)),
            pl.BlockSpec((n_hidden, n_in), lambda i: (0, 0)),
            pl.BlockSpec((n_hidden, 1), lambda i: (0, 0)),
            pl.BlockSpec((n_out, n_hidden), lambda i: (0, 0)),
            pl.BlockSpec((n_out, 1), lambda i: (0, 0)),
        ],
        out_specs=pl.BlockSpec((n_out, tb), lambda i: (0, i)),
        compiler_params=pltpu.CompilerParams(
            dimension_semantics=("parallel",)),
    )(x_t, w1t, b1t, w2t, b2t)

    return out[:, :B] if b_pad != B else out


# ----------------------------------------------------------------------------
# Self-test
# ----------------------------------------------------------------------------
if __name__ == "__main__":
    # Shapes consistent with Net_sigmoid(n_input, n_hidden, n_output)
    B, n_input, n_hidden, n_output = 8, 16, 32, 4

    key = jax.random.PRNGKey(0)
    kx, k1, kb1, k2, kb2, kxb, kxc = jax.random.split(key, 7)

    x = jax.random.normal(kx, (B, n_input), dtype=jnp.float32)

    # Deterministic init mimicking torch.nn.Linear defaults; weights stored as
    # (in, out); biases 1-D like torch.
    lim1 = 1.0 / jnp.sqrt(jnp.float32(n_input))
    w1 = jax.random.uniform(k1, (n_input, n_hidden), jnp.float32, -lim1, lim1)
    b1 = jax.random.uniform(kb1, (n_hidden,), jnp.float32, -lim1, lim1)

    lim2 = 1.0 / jnp.sqrt(jnp.float32(n_hidden))
    w2 = jax.random.uniform(k2, (n_hidden, n_output), jnp.float32, -lim2, lim2)
    b2 = jax.random.uniform(kb2, (n_output,), jnp.float32, -lim2, lim2)

    def ref_fn(xx):
        return jax.nn.sigmoid(xx @ w1 + b1) @ w2 + b2

    tol = dict(atol=1e-4, rtol=1e-4)

    # 1) Small batch -> single un-gridded VMEM block.
    out = jax.block_until_ready(net_sigmoid(x, w1, b1, w2, b2))
    assert out.shape == (B, n_output)
    assert jnp.allclose(out, ref_fn(x), **tol)

    # 2) Tiled path with explicit (non-dividing) tile: padding + slice exercised.
    Bb = 600
    xb = jax.random.normal(kxb, (Bb, n_input), dtype=jnp.float32)
    outb = jax.block_until_ready(net_sigmoid(xb, w1, b1, w2, b2, block_b=128))
    assert outb.shape == (Bb, n_output)
    assert jnp.allclose(outb, ref_fn(xb), **tol)

    # 3) Auto-dispatched tiled path (VMEM-budgeted, multi-tile tb).
    Bc = 2500
    xc = jax.random.normal(kxc, (Bc, n_input), dtype=jnp.float32)
    outc = jax.block_until_ready(net_sigmoid(xc, w1, b1, w2, b2))
    assert outc.shape == (Bc, n_output)
    assert jnp.allclose(outc, ref_fn(xc), **tol)

    # 4) Lane-dense feature-major path (x^T in, y^T out): small + tiled.
    outt = jax.block_until_ready(net_sigmoid_feature_major(x.T, w1, b1, w2, b2))
    assert outt.shape == (n_output, B)
    assert jnp.allclose(outt.T, ref_fn(x), **tol)

    outtb = jax.block_until_ready(
        net_sigmoid_feature_major(xb.T, w1, b1, w2, b2, block_b=256))
    assert outtb.shape == (n_output, Bb)
    assert jnp.allclose(outtb.T, ref_fn(xb), **tol)

    print("KERNEL_OK")
</pallas_src>

<mosaic_0001>
module attributes {stable_mosaic.version = 11 : i64} {
  func.func @net_sigmoid_kernel(%arg0: memref<8x16xf32, #tpu.memory_space<vmem>>, %arg1: memref<16x32xf32, #tpu.memory_space<vmem>>, %arg2: memref<1x32xf32, #tpu.memory_space<vmem>>, %arg3: memref<32x4xf32, #tpu.memory_space<vmem>>, %arg4: memref<1x4xf32, #tpu.memory_space<vmem>>, %arg5: memref<8x4xf32, #tpu.memory_space<vmem>>) attributes {dimension_semantics = [], scalar_prefetch = 0 : i64, scratch_operands = 0 : i64, tpu.core_type = #tpu.core_type<tc>} {
    %c0 = arith.constant 0 : index
    %c0_0 = arith.constant 0 : index
    %0 = vector.load %arg0[%c0, %c0_0] : memref<8x16xf32, #tpu.memory_space<vmem>>, vector<8x16xf32>
    %c0_1 = arith.constant 0 : index
    %c0_2 = arith.constant 0 : index
    %1 = vector.load %arg1[%c0_1, %c0_2] : memref<16x32xf32, #tpu.memory_space<vmem>>, vector<16x32xf32>
    %cst = arith.constant dense<0.000000e+00> : vector<8x32xf32>
    %2 = tpu.matmul %0, %1, %cst {dimension_numbers = #tpu.dot_dimension_numbers<[1], [0], [0], [1], [0, 0, 1, 1], [], []>} : vector<8x16xf32>, vector<16x32xf32>, vector<8x32xf32> -> vector<8x32xf32>
    %c0_3 = arith.constant 0 : index
    %c0_4 = arith.constant 0 : index
    %3 = vector.load %arg2[%c0_3, %c0_4] : memref<1x32xf32, #tpu.memory_space<vmem>>, vector<1x32xf32>
    %4 = vector.broadcast %3 : vector<1x32xf32> to vector<8x32xf32>
    %5 = arith.addf %2, %4 : vector<8x32xf32>
    %6 = arith.negf %5 : vector<8x32xf32>
    %7 = math.exp %6 : vector<8x32xf32>
    %cst_5 = arith.constant 1.000000e+00 : f32
    %8 = vector.broadcast %cst_5 : f32 to vector<8x32xf32>
    %9 = arith.addf %8, %7 : vector<8x32xf32>
    %10 = arith.divf %8, %9 : vector<8x32xf32>
    %c0_6 = arith.constant 0 : index
    %c0_7 = arith.constant 0 : index
    %11 = vector.load %arg3[%c0_6, %c0_7] : memref<32x4xf32, #tpu.memory_space<vmem>>, vector<32x4xf32>
    %cst_8 = arith.constant dense<0.000000e+00> : vector<8x4xf32>
    %12 = tpu.matmul %10, %11, %cst_8 {dimension_numbers = #tpu.dot_dimension_numbers<[1], [0], [0], [1], [0, 0, 1, 1], [], []>} : vector<8x32xf32>, vector<32x4xf32>, vector<8x4xf32> -> vector<8x4xf32>
    %c0_9 = arith.constant 0 : index
    %c0_10 = arith.constant 0 : index
    %13 = vector.load %arg4[%c0_9, %c0_10] : memref<1x4xf32, #tpu.memory_space<vmem>>, vector<1x4xf32>
    %14 = vector.broadcast %13 : vector<1x4xf32> to vector<8x4xf32>
    %15 = arith.addf %12, %14 : vector<8x4xf32>
    %c0_11 = arith.constant 0 : index
    %c0_12 = arith.constant 0 : index
    %16 = vector.load %arg5[%c0_11, %c0_12] : memref<8x4xf32, #tpu.memory_space<vmem>>, vector<8x4xf32>
    tpu.vector_store %arg5[%c0_11, %c0_12], %15 {strides = array<i32>} : memref<8x4xf32, #tpu.memory_space<vmem>>, vector<8x4xf32>,
    return
  }
}

</mosaic_0001>

<bundles_post_ra>
// kernel: tpu_custom_call.1
= control target key start
LH: loop header
LB: loop body
LE: loop exit
PB: predicated region body
PF: predicated region fallthrough
CT: control target
= control target key end

     0   :  { %v238_v0 = vmov 0.0   ;;  %vm239_vm0 = vmmov 0   ;;  %vm30_vm1 = vcmask 130048   ;;  %vm121_vm2 = vcmask 261120   ;;  %s300_s1 = inlined_call_operand.vmem [shape: f32[16,32], index: 1, kind: input, shape index: {}]   ;;  %s301_s0 = inlined_call_operand.vmem [shape: f32[8,16], index: 0, kind: input, shape index: {}]   ;;  %s302_s3 = inlined_call_operand.vmem [shape: f32[32,4], index: 3, kind: input, shape index: {}]   ;;  %s303_s2 = inlined_call_operand.vmem [shape: f32[1,32], index: 2, kind: input, shape index: {}]   ;;  %s304_s4 = inlined_call_operand.vmem [shape: f32[1,4], index: 4, kind: input, shape index: {}]   ;;  %s305_s5 = inlined_call_operand.vmem [shape: f32[8,4], index: 5, kind: output, shape index: {}]  }
   0x1   :  { %214 = vmatprep.subr.mxu0 %v238_v0  ;;  %v22_v1 = vld [vmem:[%s300_s1 + $0x8] sm:$0xff]  ;;  %v21_v2 = vld [vmem:[%s300_s1] sm:$0xff]  ;;  %218 = vmatprep.mubr.msk.f32.mxu0 %vm239_vm0, %v238_v0  ;;  %v113_v4 = vld [vmem:[%s302_s3 + $0x18] sm:$0xff]  ;;  %vm195_vm3 = vcmask 31744  }
   0x2   :  { %215 = vmatpush3.msra.mxu0 %v22_v1  ;;  %v20_v3 = vld [vmem:[%s301_s0] sm:$0xff]  ;;  %221 = vmatprep.subr.mxu1 %v238_v0  ;;  %v112_v5 = vld [vmem:[%s302_s3 + $0x10] sm:$0xff]  ;;  %v111_v6 = vld [vmem:[%s302_s3 + $0x8] sm:$0xff] }
   0x3   :  { %216 = vmatprep.subr.mxu0 %v238_v0  ;;  %229 = vmatprep.mubr.msk.f32.mxu1 %vm239_vm0, %v238_v0  ;;  %v110_v7 = vld [vmem:[%s302_s3] sm:$0xff] }
   0x4   :  { %217 = vmatpush3.msra.mxu0 %v21_v2  ;;  %222 = vmatpush3.msra.mxu1 %v113_v4  ;;  %v201_v8 = vld [vmem:[%s303_s2] ss:$0 sm:$0xff] }
   0x5   :  { %219 = vmatmul.mubr.msk.f32.vlgmr.msra.gmra.mxu0 %vm30_vm1, %v20_v3  ;;  %223 = vmatprep.subr.mxu1 %v238_v0  ;;  %v204_v16 = vld [vmem:[%s304_s4] ss:$0 sm:$0xff] }
   0x6   :  { %224 = vmatpush3.msra.mxu1 %v112_v5 }
   0x7   :  { %225 = vmatprep.subr.mxu1 %v238_v0 }
   0x8   :  { %226 = vmatpush3.msra.mxu1 %v111_v6 }
   0x9   :  { %227 = vmatprep.subr.mxu1 %v238_v0 }
   0xa   :  { %228 = vmatpush3.msra.mxu1 %v110_v7 }
  0xc5   :  { %v100_v9 = vpop.f32.mrf.mxu0 }
  0xc6   :  { %v101_v10 = vadd.f32 %v201_v8, %v100_v9 }
  0xc7   :  { %v220_v11 = vpop.f32.mrf.mxu0 }
  0xc8   :  { %v203_v12 = vmul.f32 -1.442695, %v101_v10 }
  0xca   :  { %234 = vpow2.f32 %v203_v12 }
  0xd7   :  { %v235_v13 = vpop.eup %234 }
  0xd8   :  { %v107_v14 = vadd.f32 1.0, %v235_v13 }
  0xda   :  { %236 = vrcp.f32 %v107_v14 }
  0xe7   :  { %v237_v15 = vpop.eup %236 }
  0xe8   :  { %230 = vmatmul.mubr.msk.f32.vlgmr.msra.gmra.mxu1 %vm121_vm2, %v237_v15 }
 0x1a8   :  { %v191_v17 = vpop.f32.mrf.mxu1 }
 0x1a9   :  { %v192_v18 = vadd.f32 %v204_v16, %v191_v17 }
 0x1aa   :  { %v231_v19 = vpop.f32.mrf.mxu1 }
 0x1ab   :  { %196 = vst.msk [vmem:[%s305_s5] sm:$0xff] %vm195_vm3, %v192_v18 }

</bundles_post_ra>
